<compile_context>
chip_gen: v6e
topology: v6e:2x2x1
jax: 0.10.0
libtpu: 0.0.40
codegen_flags: <defaults>
</compile_context>

<pallas_src>
import numpy as np
import jax
import jax.numpy as jnp
from jax import lax
from jax.experimental import pallas as pl
from jax.experimental.pallas import tpu as pltpu

N_BASIS = 10

_KERNEL_DTYPES = (jnp.dtype(jnp.float32), jnp.dtype(jnp.bfloat16),
                  jnp.dtype(jnp.float16))


def _round_up(v, m):
    return ((v + m - 1) // m) * m


def _make_kernel(strip, n_basis):
    """Kernel for one (tile_r, cols) block, processed in (strip, cols) row strips."""

    def kernel(a_ref, b_ref, x_ref, o_ref):
        tile_r = x_ref.shape[0]
        n_strips = tile_r // strip

        # Hoist all SMEM scalar reads out of the strip loop; they remain scalar
        # operands (vector-scalar form), not per-strip reloads / splats.
        a = [a_ref[i] for i in range(n_basis)]
        b = [b_ref[i] for i in range(n_basis)]

        def strip_body(r, carry):
            r0 = pl.multiple_of(r * strip, strip)
            x = x_ref[pl.ds(r0, strip), :].astype(jnp.float32)
            s1 = jnp.sin(x)                      # only transcendentals per element
            c1 = jnp.cos(x)
            t = c1 + c1
            # Clenshaw for  sum_k a[k-1] sin(kx) + b[k-1] cos(kx),  k = 1..n_basis:
            #   u_k = b[k-1] + t*u_{k+1} - u_{k+2}   (cos series)
            #   v_k = a[k-1] + t*v_{k+1} - v_{k+2}   (sin series)
            #   out = s1*v_1 + c1*u_1 - u_2
            u1 = jnp.full_like(t, b[n_basis - 1])
            v1 = jnp.full_like(t, a[n_basis - 1])
            u2 = jnp.zeros_like(t)
            v2 = jnp.zeros_like(t)
            for k in range(n_basis - 1, 0, -1):
                u1, u2 = b[k - 1] + (t * u1 - u2), u1
                v1, v2 = a[k - 1] + (t * v1 - v2), v1
            out = s1 * v1 + (c1 * u1 - u2)
            o_ref[pl.ds(r0, strip), :] = out.astype(o_ref.dtype)
            return carry

        lax.fori_loop(0, n_strips, strip_body, 0,
                      unroll=2 if n_strips >= 2 else 1)

    return kernel


def _forward_2d(a_f32, b_f32, x2d, *, tile_r, cols, strip, n_basis):
    rows = x2d.shape[0]
    kernel = _make_kernel(strip=strip, n_basis=n_basis)

    def build(dim_sem):
        return pl.pallas_call(
            kernel,
            out_shape=jax.ShapeDtypeStruct(x2d.shape, x2d.dtype),
            grid_spec=pltpu.PrefetchScalarGridSpec(
                num_scalar_prefetch=0,
                grid=(pl.cdiv(rows, tile_r),),
                in_specs=[
                    pl.BlockSpec(memory_space=pltpu.MemorySpace.SMEM),   # a
                    pl.BlockSpec(memory_space=pltpu.MemorySpace.SMEM),   # b
                    pl.BlockSpec((tile_r, cols), lambda r: (r, 0)),      # x tile
                ],
                out_specs=pl.BlockSpec((tile_r, cols), lambda r: (r, 0)),
            ),
            compiler_params=pltpu.CompilerParams(dimension_semantics=dim_sem),
        )

    # v7x: 2 TensorCores/chip -- CORE_PARALLEL actually splits the row-tile axis
    # across them (plain "parallel" is a near-no-op).  Fall back on single-core
    # parts / runtimes that reject it.
    core_parallel = getattr(pltpu, "CORE_PARALLEL", None)
    if core_parallel is not None:
        try:
            return jax.block_until_ready(
                build((core_parallel,))(a_f32, b_f32, x2d))
        except Exception:
            pass
    return build((pltpu.ARBITRARY,))(a_f32, b_f32, x2d)


def fourier_regression(x, a, b, n_basis=N_BASIS):
    """Pallas forward of FourierRegression. x: any shape; a, b: [n_basis]."""
    orig_shape, orig_dtype = x.shape, x.dtype

    if jnp.dtype(x.dtype) in _KERNEL_DTYPES:
        xk = x                              # kernel widens to f32 internally
    else:
        xk = x.astype(jnp.float32)          # int / f64 callers: one cast pass

    itemsize = jnp.dtype(xk.dtype).itemsize
    g = 8 if itemsize == 4 else 16          # sublane granularity (f32 / 16-bit)
    n = int(xk.size)

    # Lane-dense slab width: widest of {512,256,128} dividing n -> free view.
    if n >= (1 << 16):
        for c in (512, 256, 128):
            if n % c == 0:
                cols = c
                break
        else:
            cols = 512
    else:
        cols = 128

    flat = xk.reshape(-1)
    if n % cols == 0 and n >= g * cols:
        rows = n // cols                    # zero-copy path (no pad, no slice)
        padded = flat
    else:
        # TODO(synk): for very large n not divisible by 128, mask the tail
        # in-kernel (scalar-prefetch n) instead of this pad copy + output slice.
        total = _round_up(max(n, g * cols), g * cols)
        padded = jnp.pad(flat, (0, total - n))
        rows = total // cols
    x2d = padded.reshape(rows, cols)

    # Row tile: ~256K elements (~1 MiB f32) per buffer; keep >=2 grid steps when
    # possible so both v7x TCs get work and the DMA pipeline can overlap.
    tile_r = min((rows // g) * g,
                 _round_up((1 << 18) // cols, g),
                 _round_up(pl.cdiv(rows, 2), g))

    out2d = _forward_2d(a.astype(jnp.float32), b.astype(jnp.float32), x2d,
                        tile_r=tile_r, cols=cols, strip=g, n_basis=n_basis)

    out = out2d.reshape(-1)
    if out.size != n:
        out = out[:n]
    out = out.reshape(orig_shape)
    return out if out.dtype == orig_dtype else out.astype(orig_dtype)


def fourier_regression_ref(x, a, b, n_basis=N_BASIS):
    """Pure-JAX reference mirroring the PyTorch loop."""
    xf = x.astype(jnp.float32)
    out = jnp.zeros_like(xf)
    for i in range(n_basis):
        out = out + a[i] * jnp.sin((i + 1) * xf) + b[i] * jnp.cos((i + 1) * xf)
    return out.astype(x.dtype)


if __name__ == "__main__":
    key = jax.random.PRNGKey(0)
    ka, kb, kx = jax.random.split(key, 3)

    # Parameters as in the module's __init__ (torch.randn(n_basis)).
    a = jax.random.normal(ka, (N_BASIS,), dtype=jnp.float32)
    b = jax.random.normal(kb, (N_BASIS,), dtype=jnp.float32)

    # Small inputs: a 4-D tensor (2048 elems, exercises the zero-copy
    # lane-aligned path) and the module's own example linspace(-pi, pi, 100)
    # (exercises the padded-tail path).
    x_nd = jax.random.normal(kx, (2, 4, 16, 16), dtype=jnp.float32)
    x_lin = jnp.linspace(-np.pi, np.pi, 100, dtype=jnp.float32)

    for x in (x_nd, x_lin):
        out = jax.block_until_ready(fourier_regression(x, a, b))
        ref = fourier_regression_ref(x, a, b)
        assert out.shape == x.shape and out.dtype == x.dtype
        # Clenshaw + the f32 reference each carry a few ulp; 2e-5 abs headroom.
        np.testing.assert_allclose(np.asarray(out), np.asarray(ref),
                                   rtol=1e-5, atol=2e-5)
    print("KERNEL_OK")
</pallas_src>

<mosaic_0001>
module attributes {stable_mosaic.version = 11 : i64} {
  func.func @kernel(%arg0: i32, %arg1: memref<10xf32, #tpu.memory_space<smem>>, %arg2: memref<10xf32, #tpu.memory_space<smem>>, %arg3: memref<8x128xf32, #tpu.memory_space<vmem>>, %arg4: memref<8x128xf32, #tpu.memory_space<vmem>>) attributes {dimension_semantics = [#tpu.dimension_semantics<core_parallel>], iteration_bounds = array<i64: 2>, scalar_prefetch = 0 : i64, scratch_operands = 0 : i64, tpu.core_type = #tpu.core_type<tc>, window_params = [{transform_indices = @transform_0, window_bounds = array<i64: 10>}, {transform_indices = @transform_1, window_bounds = array<i64: 10>}, {transform_indices = @transform_2, window_bounds = array<i64: 8, 128>}, {transform_indices = @transform_3, window_bounds = array<i64: 8, 128>}]} {
    %c0 = arith.constant 0 : index
    %0 = memref.load %arg1[%c0] : memref<10xf32, #tpu.memory_space<smem>>
    %c1 = arith.constant 1 : index
    %1 = memref.load %arg1[%c1] : memref<10xf32, #tpu.memory_space<smem>>
    %c2 = arith.constant 2 : index
    %2 = memref.load %arg1[%c2] : memref<10xf32, #tpu.memory_space<smem>>
    %c3 = arith.constant 3 : index
    %3 = memref.load %arg1[%c3] : memref<10xf32, #tpu.memory_space<smem>>
    %c4 = arith.constant 4 : index
    %4 = memref.load %arg1[%c4] : memref<10xf32, #tpu.memory_space<smem>>
    %c5 = arith.constant 5 : index
    %5 = memref.load %arg1[%c5] : memref<10xf32, #tpu.memory_space<smem>>
    %c6 = arith.constant 6 : index
    %6 = memref.load %arg1[%c6] : memref<10xf32, #tpu.memory_space<smem>>
    %c7 = arith.constant 7 : index
    %7 = memref.load %arg1[%c7] : memref<10xf32, #tpu.memory_space<smem>>
    %c8 = arith.constant 8 : index
    %8 = memref.load %arg1[%c8] : memref<10xf32, #tpu.memory_space<smem>>
    %c9 = arith.constant 9 : index
    %9 = memref.load %arg1[%c9] : memref<10xf32, #tpu.memory_space<smem>>
    %c0_0 = arith.constant 0 : index
    %10 = memref.load %arg2[%c0_0] : memref<10xf32, #tpu.memory_space<smem>>
    %c1_1 = arith.constant 1 : index
    %11 = memref.load %arg2[%c1_1] : memref<10xf32, #tpu.memory_space<smem>>
    %c2_2 = arith.constant 2 : index
    %12 = memref.load %arg2[%c2_2] : memref<10xf32, #tpu.memory_space<smem>>
    %c3_3 = arith.constant 3 : index
    %13 = memref.load %arg2[%c3_3] : memref<10xf32, #tpu.memory_space<smem>>
    %c4_4 = arith.constant 4 : index
    %14 = memref.load %arg2[%c4_4] : memref<10xf32, #tpu.memory_space<smem>>
    %c5_5 = arith.constant 5 : index
    %15 = memref.load %arg2[%c5_5] : memref<10xf32, #tpu.memory_space<smem>>
    %c6_6 = arith.constant 6 : index
    %16 = memref.load %arg2[%c6_6] : memref<10xf32, #tpu.memory_space<smem>>
    %c7_7 = arith.constant 7 : index
    %17 = memref.load %arg2[%c7_7] : memref<10xf32, #tpu.memory_space<smem>>
    %c8_8 = arith.constant 8 : index
    %18 = memref.load %arg2[%c8_8] : memref<10xf32, #tpu.memory_space<smem>>
    %c9_9 = arith.constant 9 : index
    %19 = memref.load %arg2[%c9_9] : memref<10xf32, #tpu.memory_space<smem>>
    %c0_i32 = arith.constant 0 : i32
    %c8_i32 = arith.constant 8 : i32
    %20 = arith.muli %c0_i32, %c8_i32 : i32
    %21 = tpu.assume_multiple %20, 8 : i32
    %22 = arith.index_cast %21 : i32 to index
    %c0_10 = arith.constant 0 : index
    %23 = vector.load %arg3[%22, %c0_10] : memref<8x128xf32, #tpu.memory_space<vmem>>, vector<8x128xf32>
    %24 = math.sin %23 : vector<8x128xf32>
    %25 = math.cos %23 : vector<8x128xf32>
    %26 = arith.addf %25, %25 : vector<8x128xf32>
    %27 = vector.broadcast %19 : f32 to vector<8x128xf32>
    %28 = vector.broadcast %9 : f32 to vector<8x128xf32>
    %cst = arith.constant 0.000000e+00 : f32
    %29 = vector.broadcast %cst : f32 to vector<8x128xf32>
    %cst_11 = arith.constant 0.000000e+00 : f32
    %30 = vector.broadcast %cst_11 : f32 to vector<8x128xf32>
    %31 = arith.mulf %26, %27 : vector<8x128xf32>
    %32 = arith.subf %31, %29 : vector<8x128xf32>
    %33 = vector.broadcast %18 : f32 to vector<8x128xf32>
    %34 = arith.addf %33, %32 : vector<8x128xf32>
    %35 = arith.mulf %26, %28 : vector<8x128xf32>
    %36 = arith.subf %35, %30 : vector<8x128xf32>
    %37 = vector.broadcast %8 : f32 to vector<8x128xf32>
    %38 = arith.addf %37, %36 : vector<8x128xf32>
    %39 = arith.mulf %26, %34 : vector<8x128xf32>
    %40 = arith.subf %39, %27 : vector<8x128xf32>
    %41 = vector.broadcast %17 : f32 to vector<8x128xf32>
    %42 = arith.addf %41, %40 : vector<8x128xf32>
    %43 = arith.mulf %26, %38 : vector<8x128xf32>
    %44 = arith.subf %43, %28 : vector<8x128xf32>
    %45 = vector.broadcast %7 : f32 to vector<8x128xf32>
    %46 = arith.addf %45, %44 : vector<8x128xf32>
    %47 = arith.mulf %26, %42 : vector<8x128xf32>
    %48 = arith.subf %47, %34 : vector<8x128xf32>
    %49 = vector.broadcast %16 : f32 to vector<8x128xf32>
    %50 = arith.addf %49, %48 : vector<8x128xf32>
    %51 = arith.mulf %26, %46 : vector<8x128xf32>
    %52 = arith.subf %51, %38 : vector<8x128xf32>
    %53 = vector.broadcast %6 : f32 to vector<8x128xf32>
    %54 = arith.addf %53, %52 : vector<8x128xf32>
    %55 = arith.mulf %26, %50 : vector<8x128xf32>
    %56 = arith.subf %55, %42 : vector<8x128xf32>
    %57 = vector.broadcast %15 : f32 to vector<8x128xf32>
    %58 = arith.addf %57, %56 : vector<8x128xf32>
    %59 = arith.mulf %26, %54 : vector<8x128xf32>
    %60 = arith.subf %59, %46 : vector<8x128xf32>
    %61 = vector.broadcast %5 : f32 to vector<8x128xf32>
    %62 = arith.addf %61, %60 : vector<8x128xf32>
    %63 = arith.mulf %26, %58 : vector<8x128xf32>
    %64 = arith.subf %63, %50 : vector<8x128xf32>
    %65 = vector.broadcast %14 : f32 to vector<8x128xf32>
    %66 = arith.addf %65, %64 : vector<8x128xf32>
    %67 = arith.mulf %26, %62 : vector<8x128xf32>
    %68 = arith.subf %67, %54 : vector<8x128xf32>
    %69 = vector.broadcast %4 : f32 to vector<8x128xf32>
    %70 = arith.addf %69, %68 : vector<8x128xf32>
    %71 = arith.mulf %26, %66 : vector<8x128xf32>
    %72 = arith.subf %71, %58 : vector<8x128xf32>
    %73 = vector.broadcast %13 : f32 to vector<8x128xf32>
    %74 = arith.addf %73, %72 : vector<8x128xf32>
    %75 = arith.mulf %26, %70 : vector<8x128xf32>
    %76 = arith.subf %75, %62 : vector<8x128xf32>
    %77 = vector.broadcast %3 : f32 to vector<8x128xf32>
    %78 = arith.addf %77, %76 : vector<8x128xf32>
    %79 = arith.mulf %26, %74 : vector<8x128xf32>
    %80 = arith.subf %79, %66 : vector<8x128xf32>
    %81 = vector.broadcast %12 : f32 to vector<8x128xf32>
    %82 = arith.addf %81, %80 : vector<8x128xf32>
    %83 = arith.mulf %26, %78 : vector<8x128xf32>
    %84 = arith.subf %83, %70 : vector<8x128xf32>
    %85 = vector.broadcast %2 : f32 to vector<8x128xf32>
    %86 = arith.addf %85, %84 : vector<8x128xf32>
    %87 = arith.mulf %26, %82 : vector<8x128xf32>
    %88 = arith.subf %87, %74 : vector<8x128xf32>
    %89 = vector.broadcast %11 : f32 to vector<8x128xf32>
    %90 = arith.addf %89, %88 : vector<8x128xf32>
    %91 = arith.mulf %26, %86 : vector<8x128xf32>
    %92 = arith.subf %91, %78 : vector<8x128xf32>
    %93 = vector.broadcast %1 : f32 to vector<8x128xf32>
    %94 = arith.addf %93, %92 : vector<8x128xf32>
    %95 = arith.mulf %26, %90 : vector<8x128xf32>
    %96 = arith.subf %95, %82 : vector<8x128xf32>
    %97 = vector.broadcast %10 : f32 to vector<8x128xf32>
    %98 = arith.addf %97, %96 : vector<8x128xf32>
    %99 = arith.mulf %26, %94 : vector<8x128xf32>
    %100 = arith.subf %99, %86 : vector<8x128xf32>
    %101 = vector.broadcast %0 : f32 to vector<8x128xf32>
    %102 = arith.addf %101, %100 : vector<8x128xf32>
    %103 = arith.mulf %24, %102 : vector<8x128xf32>
    %104 = arith.mulf %25, %98 : vector<8x128xf32>
    %105 = arith.subf %104, %90 : vector<8x128xf32>
    %106 = arith.addf %103, %105 : vector<8x128xf32>
    %107 = arith.index_cast %21 : i32 to index
    %c0_12 = arith.constant 0 : index
    %108 = vector.load %arg4[%107, %c0_12] : memref<8x128xf32, #tpu.memory_space<vmem>>, vector<8x128xf32>
    tpu.vector_store %arg4[%107, %c0_12], %106 {strides = array<i32>} : memref<8x128xf32, #tpu.memory_space<vmem>>, vector<8x128xf32>,
    %c1_i32 = arith.constant 1 : i32
    return
  }
  func.func @transform_0(%arg0: i32) -> i32 {
    %c0_i32 = arith.constant 0 : i32
    %c0_i32_0 = arith.constant 0 : i32
    return %c0_i32 : i32
  }
  func.func @transform_1(%arg0: i32) -> i32 {
    %c0_i32 = arith.constant 0 : i32
    %c0_i32_0 = arith.constant 0 : i32
    return %c0_i32 : i32
  }
  func.func @transform_2(%arg0: i32) -> (i32, i32) {
    %c0_i32 = arith.constant 0 : i32
    %c0_i32_0 = arith.constant 0 : i32
    return %arg0, %c0_i32 : i32, i32
  }
  func.func @transform_3(%arg0: i32) -> (i32, i32) {
    %c0_i32 = arith.constant 0 : i32
    %c0_i32_0 = arith.constant 0 : i32
    return %arg0, %c0_i32 : i32, i32
  }
}

module attributes {stable_mosaic.version = 11 : i64} {
  func.func @kernel(%arg0: i32, %arg1: memref<10xf32, #tpu.memory_space<smem>>, %arg2: memref<10xf32, #tpu.memory_space<smem>>, %arg3: memref<8x128xf32, #tpu.memory_space<vmem>>, %arg4: memref<8x128xf32, #tpu.memory_space<vmem>>) attributes {dimension_semantics = [#tpu.dimension_semantics<arbitrary>], iteration_bounds = array<i64: 2>, scalar_prefetch = 0 : i64, scratch_operands = 0 : i64, tpu.core_type = #tpu.core_type<tc>, window_params = [{transform_indices = @transform_0, window_bounds = array<i64: 10>}, {transform_indices = @transform_1, window_bounds = array<i64: 10>}, {transform_indices = @transform_2, window_bounds = array<i64: 8, 128>}, {transform_indices = @transform_3, window_bounds = array<i64: 8, 128>}]} {
    %c0 = arith.constant 0 : index
    %0 = memref.load %arg1[%c0] : memref<10xf32, #tpu.memory_space<smem>>
    %c1 = arith.constant 1 : index
    %1 = memref.load %arg1[%c1] : memref<10xf32, #tpu.memory_space<smem>>
    %c2 = arith.constant 2 : index
    %2 = memref.load %arg1[%c2] : memref<10xf32, #tpu.memory_space<smem>>
    %c3 = arith.constant 3 : index
    %3 = memref.load %arg1[%c3] : memref<10xf32, #tpu.memory_space<smem>>
    %c4 = arith.constant 4 : index
    %4 = memref.load %arg1[%c4] : memref<10xf32, #tpu.memory_space<smem>>
    %c5 = arith.constant 5 : index
    %5 = memref.load %arg1[%c5] : memref<10xf32, #tpu.memory_space<smem>>
    %c6 = arith.constant 6 : index
    %6 = memref.load %arg1[%c6] : memref<10xf32, #tpu.memory_space<smem>>
    %c7 = arith.constant 7 : index
    %7 = memref.load %arg1[%c7] : memref<10xf32, #tpu.memory_space<smem>>
    %c8 = arith.constant 8 : index
    %8 = memref.load %arg1[%c8] : memref<10xf32, #tpu.memory_space<smem>>
    %c9 = arith.constant 9 : index
    %9 = memref.load %arg1[%c9] : memref<10xf32, #tpu.memory_space<smem>>
    %c0_0 = arith.constant 0 : index
    %10 = memref.load %arg2[%c0_0] : memref<10xf32, #tpu.memory_space<smem>>
    %c1_1 = arith.constant 1 : index
    %11 = memref.load %arg2[%c1_1] : memref<10xf32, #tpu.memory_space<smem>>
    %c2_2 = arith.constant 2 : index
    %12 = memref.load %arg2[%c2_2] : memref<10xf32, #tpu.memory_space<smem>>
    %c3_3 = arith.constant 3 : index
    %13 = memref.load %arg2[%c3_3] : memref<10xf32, #tpu.memory_space<smem>>
    %c4_4 = arith.constant 4 : index
    %14 = memref.load %arg2[%c4_4] : memref<10xf32, #tpu.memory_space<smem>>
    %c5_5 = arith.constant 5 : index
    %15 = memref.load %arg2[%c5_5] : memref<10xf32, #tpu.memory_space<smem>>
    %c6_6 = arith.constant 6 : index
    %16 = memref.load %arg2[%c6_6] : memref<10xf32, #tpu.memory_space<smem>>
    %c7_7 = arith.constant 7 : index
    %17 = memref.load %arg2[%c7_7] : memref<10xf32, #tpu.memory_space<smem>>
    %c8_8 = arith.constant 8 : index
    %18 = memref.load %arg2[%c8_8] : memref<10xf32, #tpu.memory_space<smem>>
    %c9_9 = arith.constant 9 : index
    %19 = memref.load %arg2[%c9_9] : memref<10xf32, #tpu.memory_space<smem>>
    %c0_i32 = arith.constant 0 : i32
    %c8_i32 = arith.constant 8 : i32
    %20 = arith.muli %c0_i32, %c8_i32 : i32
    %21 = tpu.assume_multiple %20, 8 : i32
    %22 = arith.index_cast %21 : i32 to index
    %c0_10 = arith.constant 0 : index
    %23 = vector.load %arg3[%22, %c0_10] : memref<8x128xf32, #tpu.memory_space<vmem>>, vector<8x128xf32>
    %24 = math.sin %23 : vector<8x128xf32>
    %25 = math.cos %23 : vector<8x128xf32>
    %26 = arith.addf %25, %25 : vector<8x128xf32>
    %27 = vector.broadcast %19 : f32 to vector<8x128xf32>
    %28 = vector.broadcast %9 : f32 to vector<8x128xf32>
    %cst = arith.constant 0.000000e+00 : f32
    %29 = vector.broadcast %cst : f32 to vector<8x128xf32>
    %cst_11 = arith.constant 0.000000e+00 : f32
    %30 = vector.broadcast %cst_11 : f32 to vector<8x128xf32>
    %31 = arith.mulf %26, %27 : vector<8x128xf32>
    %32 = arith.subf %31, %29 : vector<8x128xf32>
    %33 = vector.broadcast %18 : f32 to vector<8x128xf32>
    %34 = arith.addf %33, %32 : vector<8x128xf32>
    %35 = arith.mulf %26, %28 : vector<8x128xf32>
    %36 = arith.subf %35, %30 : vector<8x128xf32>
    %37 = vector.broadcast %8 : f32 to vector<8x128xf32>
    %38 = arith.addf %37, %36 : vector<8x128xf32>
    %39 = arith.mulf %26, %34 : vector<8x128xf32>
    %40 = arith.subf %39, %27 : vector<8x128xf32>
    %41 = vector.broadcast %17 : f32 to vector<8x128xf32>
    %42 = arith.addf %41, %40 : vector<8x128xf32>
    %43 = arith.mulf %26, %38 : vector<8x128xf32>
    %44 = arith.subf %43, %28 : vector<8x128xf32>
    %45 = vector.broadcast %7 : f32 to vector<8x128xf32>
    %46 = arith.addf %45, %44 : vector<8x128xf32>
    %47 = arith.mulf %26, %42 : vector<8x128xf32>
    %48 = arith.subf %47, %34 : vector<8x128xf32>
    %49 = vector.broadcast %16 : f32 to vector<8x128xf32>
    %50 = arith.addf %49, %48 : vector<8x128xf32>
    %51 = arith.mulf %26, %46 : vector<8x128xf32>
    %52 = arith.subf %51, %38 : vector<8x128xf32>
    %53 = vector.broadcast %6 : f32 to vector<8x128xf32>
    %54 = arith.addf %53, %52 : vector<8x128xf32>
    %55 = arith.mulf %26, %50 : vector<8x128xf32>
    %56 = arith.subf %55, %42 : vector<8x128xf32>
    %57 = vector.broadcast %15 : f32 to vector<8x128xf32>
    %58 = arith.addf %57, %56 : vector<8x128xf32>
    %59 = arith.mulf %26, %54 : vector<8x128xf32>
    %60 = arith.subf %59, %46 : vector<8x128xf32>
    %61 = vector.broadcast %5 : f32 to vector<8x128xf32>
    %62 = arith.addf %61, %60 : vector<8x128xf32>
    %63 = arith.mulf %26, %58 : vector<8x128xf32>
    %64 = arith.subf %63, %50 : vector<8x128xf32>
    %65 = vector.broadcast %14 : f32 to vector<8x128xf32>
    %66 = arith.addf %65, %64 : vector<8x128xf32>
    %67 = arith.mulf %26, %62 : vector<8x128xf32>
    %68 = arith.subf %67, %54 : vector<8x128xf32>
    %69 = vector.broadcast %4 : f32 to vector<8x128xf32>
    %70 = arith.addf %69, %68 : vector<8x128xf32>
    %71 = arith.mulf %26, %66 : vector<8x128xf32>
    %72 = arith.subf %71, %58 : vector<8x128xf32>
    %73 = vector.broadcast %13 : f32 to vector<8x128xf32>
    %74 = arith.addf %73, %72 : vector<8x128xf32>
    %75 = arith.mulf %26, %70 : vector<8x128xf32>
    %76 = arith.subf %75, %62 : vector<8x128xf32>
    %77 = vector.broadcast %3 : f32 to vector<8x128xf32>
    %78 = arith.addf %77, %76 : vector<8x128xf32>
    %79 = arith.mulf %26, %74 : vector<8x128xf32>
    %80 = arith.subf %79, %66 : vector<8x128xf32>
    %81 = vector.broadcast %12 : f32 to vector<8x128xf32>
    %82 = arith.addf %81, %80 : vector<8x128xf32>
    %83 = arith.mulf %26, %78 : vector<8x128xf32>
    %84 = arith.subf %83, %70 : vector<8x128xf32>
    %85 = vector.broadcast %2 : f32 to vector<8x128xf32>
    %86 = arith.addf %85, %84 : vector<8x128xf32>
    %87 = arith.mulf %26, %82 : vector<8x128xf32>
    %88 = arith.subf %87, %74 : vector<8x128xf32>
    %89 = vector.broadcast %11 : f32 to vector<8x128xf32>
    %90 = arith.addf %89, %88 : vector<8x128xf32>
    %91 = arith.mulf %26, %86 : vector<8x128xf32>
    %92 = arith.subf %91, %78 : vector<8x128xf32>
    %93 = vector.broadcast %1 : f32 to vector<8x128xf32>
    %94 = arith.addf %93, %92 : vector<8x128xf32>
    %95 = arith.mulf %26, %90 : vector<8x128xf32>
    %96 = arith.subf %95, %82 : vector<8x128xf32>
    %97 = vector.broadcast %10 : f32 to vector<8x128xf32>
    %98 = arith.addf %97, %96 : vector<8x128xf32>
    %99 = arith.mulf %26, %94 : vector<8x128xf32>
    %100 = arith.subf %99, %86 : vector<8x128xf32>
    %101 = vector.broadcast %0 : f32 to vector<8x128xf32>
    %102 = arith.addf %101, %100 : vector<8x128xf32>
    %103 = arith.mulf %24, %102 : vector<8x128xf32>
    %104 = arith.mulf %25, %98 : vector<8x128xf32>
    %105 = arith.subf %104, %90 : vector<8x128xf32>
    %106 = arith.addf %103, %105 : vector<8x128xf32>
    %107 = arith.index_cast %21 : i32 to index
    %c0_12 = arith.constant 0 : index
    %108 = vector.load %arg4[%107, %c0_12] : memref<8x128xf32, #tpu.memory_space<vmem>>, vector<8x128xf32>
    tpu.vector_store %arg4[%107, %c0_12], %106 {strides = array<i32>} : memref<8x128xf32, #tpu.memory_space<vmem>>, vector<8x128xf32>,
    %c1_i32 = arith.constant 1 : i32
    return
  }
  func.func @transform_0(%arg0: i32) -> i32 {
    %c0_i32 = arith.constant 0 : i32
    %c0_i32_0 = arith.constant 0 : i32
    return %c0_i32 : i32
  }
  func.func @transform_1(%arg0: i32) -> i32 {
    %c0_i32 = arith.constant 0 : i32
    %c0_i32_0 = arith.constant 0 : i32
    return %c0_i32 : i32
  }
  func.func @transform_2(%arg0: i32) -> (i32, i32) {
    %c0_i32 = arith.constant 0 : i32
    %c0_i32_0 = arith.constant 0 : i32
    return %arg0, %c0_i32 : i32, i32
  }
  func.func @transform_3(%arg0: i32) -> (i32, i32) {
    %c0_i32 = arith.constant 0 : i32
    %c0_i32_0 = arith.constant 0 : i32
    return %arg0, %c0_i32 : i32, i32
  }
}

</mosaic_0001>

<bundles_post_ra>
// kernel: tpu_custom_call.1
= control target key start
LH: loop header
LB: loop body
LE: loop exit
PB: predicated region body
PF: predicated region fallthrough
CT: control target
= control target key end

     0   :  { %8 = vsyncpa [#allocation5], 0  ;;  %s1137_s0 = inlined_call_operand.hbm [shape: f32[10], index: 0, kind: input, shape index: {}]   ;;  %s1138_s1 = inlined_call_operand.vmem [shape: f32[10], index: 1, kind: input, shape index: {}]   ;;  %s1139_s2 = inlined_call_operand.hbm [shape: f32[16,128], index: 2, kind: input, shape index: {}]   ;;  %s1140_s3 = inlined_call_operand.hbm [shape: f32[16,128], index: 3, kind: output, shape index: {}]  }
   0x1   :  { %9 = vsyncpa [#allocation6], 0 }
   0x2   :  { %10 = vsyncpa [#allocation3], 0 }
   0x3   :  { %12 = vsyncpa [#allocation3 + $0x1], 0 }
   0x4   :  { %13 = vsyncpa [#allocation4], 0 }
   0x5   :  { %15 = vsyncpa [#allocation4 + $0x1], 0  ;;  %s906_s12 = smov 0   ;;  %s908_s13 = smov 0  }
   0x6   :  { %s910_s14 = smov 0   ;;  %s912_s15 = smov 0  }
   0x7 LB: > { %s927_s16 = sadd.s32 4294967295, %s874_s15   ;;  %s625_s17 = sadd.s32 4294967294, %s874_s15   ;;  %s874_s15 = sphi %s912_s15, %s1164_s15   ;;  %s870_s14 = sphi %s910_s14, %s1163_s14   ;;  %s866_s13 = sphi %s908_s13, %s1162_s13   ;;  %s862_s12 = sphi %s906_s12, %s1161_s12  }
   0x8   : > { %p83_p0 = scmp.ne.s32.totalorder %s866_s13, %s862_s12  ;;  %p1141_p1 = scmp.eq.s32.totalorder %s927_s16, 0 }
   0x9   : > { %p107_p2 = scmp.eq.s32.totalorder %s927_s16, 1  ;;  %p113_p3 = scmp.eq.s32.totalorder %s625_s17, 1 }
   0xa   : > { %p936_p4 = por %p1141_p1, %p83_p0  ;;  %p626_p5 = scmp.ge.s32.totalorder %s874_s15, 1 }
   0xb   : > { %p941_p6 = por %p113_p3, %p83_p0  ;;  %p120_p7 = scmp.lt.s32.totalorder %s874_s15, 3 }
   0xc   : > { %s1145_s18 = scalar_select %p936_p4, 1, 0 }
   0xd   : > { %s1146_s19 = scalar_select %p941_p6, 1, 0 }
   0xe   : > { %p946_p8 = pnand %p626_p5, %p120_p7  ;;  %s142_s23 = sshll.u32 %s1138_s1, 4  ;;  %s143_s23 = int_to_ptr.vmem [resolvable:$true] %s142_s23 }
   0xf   : > { %s957_s24 = sadd.s32 1, %s874_s15   ;;  %s70_s27 = sadd.s32 1, %s870_s14 }
  0x10   : > { %s1147_s20 = scalar_select %p946_p8, 1, 0 }
  0x11   : > { %p683_p10 = pneg %p946_p8  ;;  %s67_s26 = ssub.s32 %s874_s15, %s957_s24 }
  0x12   : > { %p968_p12 = scmp.eq.s32.totalorder %s67_s26, 0  ;;  %s876_s29 = smov [#allocation2]  }
  0x13   : > { %p961_p11 = pnand %p683_p10, %p1141_p1  ;;  %s759_s5 = scalar_lea.vmem %s143_s23, 16 }
  0x14   : > { %p760_p13 = scmp.ne.s32.totalorder %s143_s23, %s759_s5  ;;  %p767_p7 = scmp.lt.s32.totalorder %s143_s23, %s143_s23 }
  0x15   : > { %686 = dma.hbm_to_smem (!%p961_p11), %s1137_s0, 16, %s876_s29, [#allocation5]  }
  0x16   : > { %p761_p0 = pneg %p961_p11  ;;  %p768_p10 = scmp.lt.s32.totalorder %s759_s5, %s759_s5 }
  0x18   : > { %p762_p3 = pnand %p761_p0, %p760_p13  ;;  %p769_p9 = por %p768_p10, %p767_p7 }
  0x1a   : > { %p763_p5 = pneg %p762_p3 }
  0x1c   : > { %p770_p1 = pnand %p769_p9, %p763_p5 }
  0x1e   : > { %773 = shalt.err (!%p770_p1)
}
  0x1f   : > { %s877_s6 = smov [#allocation7]   ;;  %p77_p13 = scmp.ne.s32.totalorder %s870_s14, %s866_s13 }
  0x20   : > { %689 = dma.vmem_to_smem (!%p961_p11), %s143_s23, 16, %s877_s6, [#allocation6]  }
  0x21   : > { %s984_s7 = scalar_select %p968_p12, %s870_s14, %s70_s27  }
  0x22   : > { %p78_p0 = scmp.eq.s32.totalorder %s874_s15, 0  ;;  %p700_p9 = scmp.lt.s32.totalorder %s874_s15, 2 }
  0x23   : > { %s153_s8 = sand.u32 1, %s870_s14   ;;  %p993_p3 = por %p107_p2, %p77_p13 }
  0x24   : > { %p79_p1 = por %p78_p0, %p77_p13  ;;  %s630_s10 = sshll.u32 %s153_s8, 3 }
  0x25   : > { %s1150_s9 = scalar_select %p993_p3, 1, 0 }
  0x26   : > { %s631_s11 = sshll.u32 %s874_s15, 7  ;;  %s157_s23 = scalar_lea.vmem [#allocation8], %s630_s10 }
  0x27   : > { %s1001_s22 = scalar_lea.hbm %s1139_s2, %s631_s11  ;;  %s164_s25 = sshll.u32 %s157_s23, 4  ;;  %s165_s25 = int_to_ptr.vmem [resolvable:$true] %s164_s25 }
  0x28   : > { %p1003_p11 = pnand %p700_p9, %p79_p1  ;;  %s154_s27 = scalar_lea.sflag [#allocation3], %s153_s8 }
  0x29   : > { %s774_s28 = scalar_lea.hbm %s1001_s22, 128  ;;  %s779_s4 = scalar_lea.hbm %s1139_s2, 256 }
  0x2a   : > { %p775_p2 = scmp.ne.s32.totalorder %s1001_s22, %s774_s28  ;;  %p776_p12 = pneg %p1003_p11 }
  0x2b   : > { %p780_p10 = scmp.lt.s32.totalorder %s1001_s22, %s1139_s2  ;;  %p781_p13 = scmp.lt.s32.totalorder %s779_s4, %s774_s28 }
  0x2c   : > { %p777_p5 = pnand %p776_p12, %p775_p2 }
  0x2d   : > { %p782_p0 = por %p781_p13, %p780_p10 }
  0x2e   : > { %p778_p7 = pneg %p777_p5 }
  0x30   : > { %p783_p9 = pnand %p782_p0, %p778_p7 }
  0x32   : > { %786 = shalt.err (!%p783_p9)
}
  0x33   : > { %s787_s10 = scalar_lea.vmem %s165_s25, 128  ;;  %s878_s8 = smov [#allocation8]  }
  0x34   : > { %p788_p1 = scmp.ne.s32.totalorder %s165_s25, %s787_s10  ;;  %s792_s11 = sshll.u32 %s878_s8, 4  ;;  %s793_s11 = int_to_ptr.vmem [resolvable:$false] %s792_s11 }
  0x35   : > { %s794_s17 = scalar_lea.vmem %s793_s11, 256  ;;  %p795_p2 = scmp.lt.s32.totalorder %s165_s25, %s793_s11 }
  0x36   : > { %p790_p6 = pnand %p788_p1, %p776_p12  ;;  %p796_p5 = scmp.lt.s32.totalorder %s794_s17, %s787_s10 }
  0x38   : > { %p791_p3 = pneg %p790_p6  ;;  %p797_p4 = por %p796_p5, %p795_p2 }
  0x3a   : > { %p798_p8 = pnand %p797_p4, %p791_p3 }
  0x3c   : > { %801 = shalt.err (!%p798_p8)
}
  0x3d   : > { %693 = dma.hbm_to_vmem [thread:$0]  (!%p1003_p11), %s1001_s22, 128, %s165_s25, %s154_s27  }
  0x3e   : > { %p1152_p7 = scmp.ne.s32.totalorder %s1147_s20, 0 }
  0x3f   : > { %p1153_p10 = scmp.eq.s32.totalorder (!%p1152_p7), %s927_s16, 0 }
  0x40   : > { %173 = sbr.rel (%p1152_p7) target bundleno = 237 (0xed), region = 32 }
  0x45   : > { %845 = dma.done.wait (%p1153_p10), [#allocation5], 16   ;;  %p1154_p6 = pmov %p1153_p10 }
  0x47   : > { %847 = vsyncadd (%p1154_p6), [#allocation5], 4294967280  ;;  %p1155_p12 = pmov %p1154_p6 }
  0x48   : > { %p1156_p13 = pmov %p1154_p6 }
  0x49   : > { %849 = dma.done.wait (%p1155_p12), [#allocation6], 16  }
  0x4a   : > { %851 = vsyncadd (%p1156_p13), [#allocation6], 4294967280  ;;  %s1032_s21 = sand.u32 1, %s866_s13   ;;  %p1157_p4 = scmp.ne.s32.totalorder %s1145_s18, 0 }
  0x4b   : > { %s635_s20 = sshll.u32 %s1032_s21, 3  ;;  %s184_s22 = scalar_lea.sflag [#allocation3], %s1032_s21 }
  0x4c   : > { %s187_s23 = scalar_lea.vmem [#allocation8], %s635_s20 }
  0x4d   : > { %853 = dma.done.wait (%p1157_p4), %s184_s22, 128  }
  0x4e   : > { %855 = vsyncadd (%p1157_p4), %s184_s22, 4294967168 }
  0x4f   : > { %192 = sfence }
  0x50   : > { %v1042_v0 = vld [vmem:[%s187_s23] sm:$0xff]  ;;  %v879_v12 = vmov 683565275   ;;  %v880_v14 = vmov 2475754826   ;;  %s1062_s18 = sld [smem:[#allocation2 + $0x9]] }
  0x51   : > { %v235_v1 = vand.u32 2139095040, %v1042_v0  ;;  %v232_v3 = vand.u32 2147483647, %v1042_v0  ;;  %v881_v16 = vmov 2131351028   ;;  %vm234_vm7 = vcmp.lt.s32.totalorder %v1042_v0, 0 }
  0x52   : > { %v882_v18 = vmov 2102212464   ;;  %v883_v20 = vmov 920167782   ;;  %v884_v27 = vmov 1326507024   ;;  %vm324_vm15 = vweird.f32 %v1042_v0 }
  0x53   : > { %v236_v2 = vshrl.u32 %v235_v1, 23  ;;  %v239_v6 = vand.u32 8388607, %v232_v3  ;;  %vm233_vm8 = vcmp.le.f32.partialorder %v232_v3, 0.7853982  ;;  %s1064_s25 = sld [smem:[#allocation7 + $0x9]] }
  0x54   : > { %s1066_s26 = sld [smem:[#allocation2 + $0x8]]  ;;  %p1158_p3 = scmp.ne.s32.totalorder %s1150_s9, 0 }
  0x55   : > { %v655_v4 = vadd.s32 4294967169, %v236_v2  ;;  %v240_v9 = vor.u32 8388608, %v239_v6  ;;  %s653_s27 = sld [smem:[#allocation7 + $0x8]] }
  0x56   : > { %s643_s28 = sld [smem:[#allocation2 + $0x7]] }
  0x57   : > { %v242_v5 = vadd.s32 1, %v655_v4  ;;  %v280_v29 = vshll.u32 %v240_v9, 8  ;;  %s652_s29 = sld [smem:[#allocation7 + $0x7]] }
  0x58   : > { %s642_s30 = sld [smem:[#allocation2 + $0x6]] }
  0x59   : > { %vm243_vm0 = vcmp.gt.s32.totalorder %v242_v5, 0  ;;  %s651_s4 = sld [smem:[#allocation7 + $0x6]] }
  0x5a   : > { %v244_v7 = vsel %vm243_vm0, %v242_v5, 0  ;;  %s641_s5 = sld [smem:[#allocation2 + $0x5]] }
  0x5b   : > { %v246_v8 = vand.u32 31, %v244_v7  ;;  %v245_v10 = vshrl.u32 %v244_v7, 5  ;;  %s650_s6 = sld [smem:[#allocation7 + $0x5]] }
  0x5c   : > { %s640_s10 = sld [smem:[#allocation2 + $0x4]] }
  0x5d   : > { %v247_v11 = vsub.s32 32, %v246_v8  ;;  %v249_v13 = vshll.u32 %v879_v12, %v246_v8  ;;  %v252_v15 = vshll.u32 %v880_v14, %v246_v8  ;;  %v255_v17 = vshll.u32 %v881_v16, %v246_v8  ;;  %s649_s8 = sld [smem:[#allocation7 + $0x4]] }
  0x5e   : > { %v258_v19 = vshll.u32 %v882_v18, %v246_v8  ;;  %v261_v21 = vshll.u32 %v883_v20, %v246_v8  ;;  %vm264_vm1 = vcmp.lt.s32.totalorder %v245_v10, 1  ;;  %vm267_vm2 = vcmp.lt.s32.totalorder %v245_v10, 4  ;;  %s639_s11 = sld [smem:[#allocation2 + $0x3]] }
  0x5f   : > { %v248_v22 = vshrl.u32 %v879_v12, %v247_v11  ;;  %v250_v23 = vshrl.u32 %v880_v14, %v247_v11  ;;  %v253_v24 = vshrl.u32 %v881_v16, %v247_v11  ;;  %v256_v25 = vshrl.u32 %v882_v18, %v247_v11  ;;  %s648_s17 = sld [smem:[#allocation7 + $0x3]] }
  0x60   : > { %v259_v26 = vshrl.u32 %v883_v20, %v247_v11  ;;  %v262_v28 = vshrl.u32 %v884_v27, %v247_v11  ;;  %vm265_vm3 = vcmp.lt.s32.totalorder %v245_v10, 2  ;;  %vm266_vm4 = vcmp.lt.s32.totalorder %v245_v10, 3  ;;  %s638_s22 = sld [smem:[#allocation2 + $0x2]] }
  0x61   : > { %v251_v30 = vor.u32 %v250_v23, %v249_v13  ;;  %v254_v31 = vor.u32 %v253_v24, %v252_v15  ;;  %v257_v32 = vor.u32 %v256_v25, %v255_v17  ;;  %s647_s23 = sld [smem:[#allocation7 + $0x2]] }
  0x62   : > { %v260_v33 = vor.u32 %v259_v26, %v258_v19  ;;  %v263_v34 = vor.u32 %v262_v28, %v261_v21 }
  0x63   : > { %v268_v35 = vsel %vm264_vm1, %v248_v22, %v251_v30  ;;  %v269_v36 = vsel %vm267_vm2, %v257_v32, 2102212464  ;;  %v272_v37 = vsel %vm264_vm1, %v251_v30, %v254_v31  ;;  %v276_v38 = vsel %vm264_vm1, %v254_v31, %v257_v32 }
  0x64   : > { %v270_v39 = vsel %vm266_vm4, %v254_v31, %v269_v36  ;;  %v273_v40 = vsel %vm267_vm2, %v260_v33, 920167782  ;;  %v277_v41 = vsel %vm267_vm2, %v263_v34, 1326507024  ;;  %v440_v34 = vstv %s1064_s25  ;;  %s646_s25 = sld [smem:[#allocation7 + $0x1]] }
  0x65   : > { %v274_v42 = vsel %vm266_vm4, %v257_v32, %v273_v40  ;;  %v278_v43 = vsel %vm266_vm4, %v260_v33, %v277_v41  ;;  %v271_v44 = vsel %vm265_vm3, %v268_v35, %v270_v39  ;;  %v441_v35 = vstv %s1062_s18  ;;  %s637_s18 = sld [smem:[#allocation2 + $0x1]] }
  0x66   : > { %v275_v45 = vsel %vm265_vm3, %v272_v37, %v274_v42  ;;  %v279_v46 = vsel %vm265_vm3, %v276_v38, %v278_v43  ;;  %v287_v51 = vmul.u32 %v280_v29, %v271_v44  ;;  %v443_v37 = vstv %s653_s27  ;;  %s221_s27 = sld [smem:[#allocation7]] }
  0x67   : > { %v1048_v47 = vmul.u32.u64.low %v280_v29, %v279_v46  ;;  %v1049_v48 = vmul.u32.u64.high %v280_v29, %v279_v46, %v1048_v47  ;;  %v1051_v49 = vmul.u32.u64.low %v280_v29, %v275_v45  ;;  %v1052_v50 = vmul.u32.u64.high %v280_v29, %v275_v45, %v1051_v49 }
  0x68   : > { %v450_v44 = vstv %s652_s29  ;;  %v454_v45 = vstv %s643_s28  ;;  %s664_s28 = sshll.u32 %s927_s16, 7  ;;  %s210_s29 = scalar_lea.vmem [#allocation9], %s635_s20 }
  0x69   : > { %vm289_vm5 = vc.u32 %v1049_v48, %v1051_v49  ;;  %v290_v52 = vadd.s32 1, %v1052_v50  ;;  %v288_v63 = vadd.s32 %v1051_v49, %v1049_v48 }
  0x6b   : > { %v291_v53 = vsel %vm289_vm5, %v290_v52, %v1052_v50  ;;  %v458_v52 = vstv %s651_s4 }
  0x6c   : > { %v292_v54 = vadd.s32 %v291_v53, %v287_v51  ;;  %v462_v53 = vstv %s642_s30  ;;  %s531_s30 = sshll.u32 %s210_s29, 4  ;;  %s532_s30 = int_to_ptr.vmem [resolvable:$true] %s531_s30 }
  0x6e   : > { %v293_v55 = vadd.s32 536870912, %v292_v54 }
  0x70   : > { %v294_v56 = vshrl.u32 %v293_v55, 30 }
  0x72   : > { %v295_v57 = vshll.u32 %v294_v56, 30  ;;  %v318_v15 = vsub.s32 4, %v294_v56 }
  0x74   : > { %v296_v58 = vsub.s32 %v292_v54, %v295_v57  ;;  %v319_v18 = vsel %vm234_vm7, %v318_v15, %v294_v56  ;;  %v486_v15 = vstv %s639_s11  ;;  %s885_s11 = smov [#allocation9]  }
  0x75   : > { %v321_v19 = vsel %vm233_vm8, 0, %v319_v18 }
  0x76   : > { %v298_v59 = vsub.s32 0, %v296_v58  ;;  %v325_v20 = vadd.s32 3, %v321_v19  ;;  %v429_v22 = vand.u32 3, %v321_v19 }
  0x78   : > { %v656_v60 = vmin.u32 %v298_v59, %v296_v58  ;;  %v326_v21 = vand.u32 3, %v325_v20  ;;  %vm434_vm10 = vcmp.eq.s32.totalorder %v429_v22, 2  ;;  %vm431_vm12 = vcmp.eq.s32.totalorder %v429_v22, 0 }
  0x79   : > { %vm430_vm14 = vcmp.lt.s32.totalorder %v429_v22, 2  ;;  %v490_v22 = vstv %s647_s23 }
  0x7a   : > { %v300_v61 = vclz %v656_v60  ;;  %vm331_vm9 = vcmp.eq.s32.totalorder %v326_v21, 2  ;;  %vm328_vm11 = vcmp.eq.s32.totalorder %v326_v21, 0  ;;  %vm327_vm13 = vcmp.lt.s32.totalorder %v326_v21, 2 }
  0x7b   : > { %v466_v60 = vstv %s650_s6  ;;  %s529_s6 = scalar_lea.hbm %s1140_s3, %s664_s28 }
  0x7c   : > { %v657_v62 = vadd.s32 4294967294, %v300_v61  ;;  %v470_v61 = vstv %s641_s5 }
  0x7e   : > { %vm658_vm6 = vcmp.lt.s32.totalorder %v657_v62, 0 }
  0x7f   : > { %v303_v1 = vsel %vm658_vm6, 0, %v657_v62 }
  0x80   : > { %v304_v2 = vsub.s32 32, %v303_v1  ;;  %v305_v4 = vshll.u32 %v296_v58, %v303_v1  ;;  %v308_v5 = vsub.s32 4294967266, %v303_v1 }
  0x82   : > { %v306_v6 = vshrl.u32 %v288_v63, %v304_v2  ;;  %v309_v7 = vadd.s32 127, %v308_v5 }
  0x84   : > { %v307_v8 = vor.u32 %v306_v6, %v305_v4  ;;  %v310_v9 = vshll.u32 %v309_v7, 23  ;;  %v474_v6 = vstv %s649_s8  ;;  %v478_v7 = vstv %s640_s10  ;;  %s518_s10 = scalar_lea.sflag [#allocation4], %s1032_s21  ;;  %s802_s8 = scalar_lea.vmem %s532_s30, 128 }
  0x85   : > { %p803_p8 = scmp.ne.s32.totalorder %s532_s30, %s802_s8 }
  0x86   : > { %v311_v10 = vor.u32 4788187, %v310_v9  ;;  %v314_v11 = vcvt.s32.f32 %v307_v8 }
  0x87   : > { %p804_p11 = pnand %p803_p8, %p1158_p3 }
  0x88   : > { %v312_v12 = vand.u32 2147483647, %v311_v10 }
  0x89   : > { %p805_p0 = pneg %p804_p11 }
  0x8a   : > { %v315_v13 = vmul.f32 %v314_v11, %v312_v12 }
  0x8c   : > { %v316_v14 = vxor.u32 2147483648, %v315_v13 }
  0x8e   : > { %v317_v16 = vsel %vm234_vm7, %v316_v14, %v315_v13  ;;  %v482_v14 = vstv %s648_s17  ;;  %s806_s17 = sshll.u32 %s885_s11, 4  ;;  %s807_s17 = int_to_ptr.vmem [resolvable:$false] %s806_s17 }
  0x8f   : > { %v320_v17 = vsel %vm233_vm8, %v1042_v0, %v317_v16  ;;  %v446_v0 = vstv %s1066_s26  ;;  %s211_s26 = sld [smem:[#allocation2]]  ;;  %s808_s16 = scalar_lea.vmem %s807_s17, 256 }
  0x90   : > { %744 = vcosq.f32 %v320_v17  ;;  %p809_p9 = scmp.lt.s32.totalorder %s532_s30, %s807_s17  ;;  %p810_p1 = scmp.lt.s32.totalorder %s808_s16, %s802_s8 }
  0x91   : > { %746 = vsinq.f32 %v320_v17 }
  0x92   : > { %p811_p2 = por %p810_p1, %p809_p9 }
  0x94   : > { %p812_p5 = pnand %p811_p2, %p805_p0 }
  0x9d   : > { %v745_v23 = vpop.eup %744 }
  0x9e   : > { %v747_v3 = vpop.eup %746  ;;  %v332_v24 = vxor.u32 2147483648, %v745_v23 }
  0x9f   : > { %v329_v25 = vxor.u32 2147483648, %v747_v3 }
  0xa0   : > { %v333_v26 = vsel %vm331_vm9, %v332_v24, %v747_v3  ;;  %v436_v27 = vsel %vm434_vm10, %v332_v24, %v747_v3 }
  0xa1   : > { %v330_v28 = vsel %vm328_vm11, %v745_v23, %v329_v25  ;;  %v433_v29 = vsel %vm431_vm12, %v745_v23, %v329_v25  ;;  %v494_v23 = vstv %s638_s22 }
  0xa2   : > { %v334_v30 = vsel %vm327_vm13, %v330_v28, %v333_v26  ;;  %v437_v31 = vsel %vm430_vm14, %v433_v29, %v436_v27  ;;  %v498_v29 = vstv %s646_s25 }
  0xa3   : > { %v1069_v32 = vsel %vm324_vm15, nan, %v334_v30  ;;  %v1071_v33 = vsel %vm324_vm15, nan, %v437_v31  ;;  %v502_v30 = vstv %s637_s18 }
  0xa4   : > { %v1077_v36 = vadd.f32 %v1071_v33, %v1071_v33 }
  0xa6   : > { %v442_v38 = vmul.f32 %v440_v34, %v1077_v36  ;;  %v445_v39 = vmul.f32 %v441_v35, %v1077_v36 }
  0xa8   : > { %v444_v40 = vadd.f32 %v443_v37, %v442_v38  ;;  %v447_v41 = vadd.f32 %v446_v0, %v445_v39  ;;  %v506_v39 = vstv %s221_s27 }
  0xaa   : > { %v448_v42 = vmul.f32 %v444_v40, %v1077_v36  ;;  %v452_v43 = vmul.f32 %v447_v41, %v1077_v36 }
  0xac   : > { %v449_v46 = vsub.f32 %v448_v42, %v440_v34  ;;  %v453_v47 = vsub.f32 %v452_v43, %v441_v35 }
  0xae   : > { %v451_v48 = vadd.f32 %v450_v44, %v449_v46  ;;  %v455_v49 = vadd.f32 %v454_v45, %v453_v47 }
  0xb0   : > { %v456_v50 = vmul.f32 %v451_v48, %v1077_v36  ;;  %v460_v51 = vmul.f32 %v455_v49, %v1077_v36 }
  0xb2   : > { %v457_v54 = vsub.f32 %v456_v50, %v444_v40  ;;  %v461_v55 = vsub.f32 %v460_v51, %v447_v41  ;;  %v510_v40 = vstv %s211_s26 }
  0xb4   : > { %v459_v56 = vadd.f32 %v458_v52, %v457_v54  ;;  %v463_v57 = vadd.f32 %v462_v53, %v461_v55 }
  0xb6   : > { %v464_v58 = vmul.f32 %v459_v56, %v1077_v36  ;;  %v468_v59 = vmul.f32 %v463_v57, %v1077_v36 }
  0xb8   : > { %v465_v62 = vsub.f32 %v464_v58, %v451_v48  ;;  %v469_v63 = vsub.f32 %v468_v59, %v455_v49 }
  0xba   : > { %v467_v1 = vadd.f32 %v466_v60, %v465_v62  ;;  %v471_v2 = vadd.f32 %v470_v61, %v469_v63 }
  0xbc   : > { %v472_v4 = vmul.f32 %v467_v1, %v1077_v36  ;;  %v476_v5 = vmul.f32 %v471_v2, %v1077_v36 }
  0xbe   : > { %v473_v8 = vsub.f32 %v472_v4, %v459_v56  ;;  %v477_v9 = vsub.f32 %v476_v5, %v463_v57 }
  0xc0   : > { %v475_v10 = vadd.f32 %v474_v6, %v473_v8  ;;  %v479_v11 = vadd.f32 %v478_v7, %v477_v9 }
  0xc2   : > { %v480_v12 = vmul.f32 %v475_v10, %v1077_v36  ;;  %v484_v13 = vmul.f32 %v479_v11, %v1077_v36 }
  0xc4   : > { %v481_v16 = vsub.f32 %v480_v12, %v467_v1  ;;  %v485_v17 = vsub.f32 %v484_v13, %v471_v2 }
  0xc6   : > { %v483_v18 = vadd.f32 %v482_v14, %v481_v16  ;;  %v487_v19 = vadd.f32 %v486_v15, %v485_v17 }
  0xc8   : > { %v488_v20 = vmul.f32 %v483_v18, %v1077_v36  ;;  %v492_v21 = vmul.f32 %v487_v19, %v1077_v36 }
  0xca   : > { %v489_v3 = vsub.f32 %v488_v20, %v475_v10  ;;  %v493_v24 = vsub.f32 %v492_v21, %v479_v11 }
  0xcc   : > { %v491_v25 = vadd.f32 %v490_v22, %v489_v3  ;;  %v495_v26 = vadd.f32 %v494_v23, %v493_v24 }
  0xce   : > { %v496_v27 = vmul.f32 %v491_v25, %v1077_v36  ;;  %v500_v28 = vmul.f32 %v495_v26, %v1077_v36 }
  0xd0   : > { %v497_v31 = vsub.f32 %v496_v27, %v483_v18  ;;  %v501_v34 = vsub.f32 %v500_v28, %v487_v19 }
  0xd2   : > { %v499_v35 = vadd.f32 %v498_v29, %v497_v31  ;;  %v503_v37 = vadd.f32 %v502_v30, %v501_v34 }
  0xd4   : > { %v504_v0 = vmul.f32 %v499_v35, %v1077_v36  ;;  %v508_v38 = vmul.f32 %v503_v37, %v1077_v36 }
  0xd6   : > { %v505_v41 = vsub.f32 %v504_v0, %v491_v25  ;;  %v509_v42 = vsub.f32 %v508_v38, %v495_v26 }
  0xd8   : > { %v507_v43 = vadd.f32 %v506_v39, %v505_v41  ;;  %v511_v44 = vadd.f32 %v510_v40, %v509_v42 }
  0xda   : > { %v512_v45 = vmul.f32 %v511_v44, %v1069_v32  ;;  %v513_v46 = vmul.f32 %v507_v43, %v1071_v33 }
  0xdc   : > { %v514_v47 = vsub.f32 %v513_v46, %v499_v35 }
  0xde   : > { %v515_v48 = vadd.f32 %v514_v47, %v512_v45 }
  0xe0   : > { %516 = vst [vmem:[%s210_s29] sm:$0xff] %v515_v48 }
  0xe1   : > { %815 = shalt.err (!%p812_p5)
}
  0xe2   : > { %s816_s20 = scalar_lea.hbm %s529_s6, 128  ;;  %s820_s23 = scalar_lea.hbm %s1140_s3, 256 }
  0xe3   : > { %p817_p7 = scmp.ne.s32.totalorder %s529_s6, %s816_s20  ;;  %p821_p12 = scmp.lt.s32.totalorder %s529_s6, %s1140_s3 }
  0xe4   : > { %p822_p13 = scmp.lt.s32.totalorder %s820_s23, %s816_s20 }
  0xe5   : > { %p818_p10 = pnand %p817_p7, %p1158_p3 }
  0xe6   : > { %p823_p4 = por %p822_p13, %p821_p12 }
  0xe7   : > { %p819_p6 = pneg %p818_p10 }
  0xe9   : > { %p824_p8 = pnand %p823_p4, %p819_p6 }
  0xeb   : > { %827 = shalt.err (!%p824_p8)
}
  0xec   : > { %681 = dma.vmem_to_hbm [thread:$0]  (%p1158_p3), %s532_s30, 128, %s529_s6, %s518_s10  }
  0xed PF: > { %s543_s26 = sand.u32 1, %s862_s12   ;;  %p1159_p11 = scmp.ne.s32.totalorder %s1146_s19, 0 }
  0xee   : > { %p1160_p0 = scmp.ge.s32.totalorder %s874_s15, 2  ;;  %s544_s27 = scalar_lea.sflag [#allocation4], %s543_s26 }
  0xf0   : > { %p695_p9 = pnand %p1160_p0, %p1159_p11 }
  0xf2   : > { %p696_p1 = pneg %p695_p9 }
  0xf4   : > { %857 = dma.done.wait (%p696_p1), %s544_s27, 128  }
  0xf5   : > { %859 = vsyncadd (%p696_p1), %s544_s27, 4294967168  ;;  %p18_p2 = scmp.ge.s32.totalorder %s957_s24, 4   ;;  %s1161_s12 = smov %s866_s13 }
  0xf6   : > { %s1162_s13 = smov %s870_s14  ;;  %s1163_s14 = smov %s984_s7 }
  0xf7   : > { %s1164_s15 = smov %s957_s24  ;;  %20 = sbr.rel (!%p18_p2) target bundleno = 7 (0x7), region = 87 }
  0xfc   :  { %549 = vsyncpa [#allocation3], 1 }
  0xfd   :  { %551 = vsyncpa [#allocation3 + $0x1], 1 }
  0xfe   :  { %552 = vsyncpa [#allocation4], 1 }
  0xff   :  { %554 = vsyncpa [#allocation4 + $0x1], 1 }
 0x100   :  { %555 = vsyncpa [#allocation5], 1 }
 0x101   :  { %557 = vsyncpa [#allocation5 + $0x1], 1 }
 0x102   :  { %558 = vsyncpa [#allocation6], 1 }
 0x103   :  { %560 = vsyncpa [#allocation6 + $0x1], 1 }

</bundles_post_ra>
